<compile_context>
chip_gen: v7x
topology: tpu7x:2x2x1
jax: 0.10.0
libtpu: 0.0.40
codegen_flags: <defaults>
</compile_context>

<pallas_src>
import functools

import jax
import jax.numpy as jnp
from jax.experimental import pallas as pl
from jax.experimental.pallas import tpu as pltpu


def _round_up(x, m):
    return ((x + m - 1) // m) * m


def _pad2(m, rows, cols, dtype):
    m = m.astype(dtype)
    return jnp.pad(m, ((0, rows - m.shape[0]), (0, cols - m.shape[1])))


# ---------------------------------------------------------------------------
# Kernel 1: per-layer feature projection  XW = X @ W  (computed exactly once,
# so the big aggregation kernel never repeats MXU work per row tile).
# ---------------------------------------------------------------------------
def project_kernel(x_ref, w_ref, o_ref):
    o_ref[...] = jnp.dot(
        x_ref[...], w_ref[...], preferred_element_type=jnp.float32
    ).astype(o_ref.dtype)


def _project(x_p, w_p, *, tile, out_dtype):
    n_pad, f_pad = x_p.shape
    d_pad = w_p.shape[1]
    return pl.pallas_call(
        project_kernel,
        out_shape=jax.ShapeDtypeStruct((n_pad, d_pad), out_dtype),
        grid=(n_pad // tile,),
        in_specs=[
            pl.BlockSpec((tile, f_pad), lambda i: (i, 0)),   # X row strip (streams)
            pl.BlockSpec((f_pad, d_pad), lambda i: (0, 0)),  # W (constant index, tiny)
        ],
        out_specs=pl.BlockSpec((tile, d_pad), lambda i: (i, 0)),
        compiler_params=pltpu.CompilerParams(
            dimension_semantics=("parallel",)),
    )(x_p, w_p)


# ---------------------------------------------------------------------------
# Kernel 2: aggregation  out = act(A_hat @ XW + b)
# Grid (i, k): acc[i] += A[i, k] @ XW[k]; bias (+ ReLU) on the last k step.
# ---------------------------------------------------------------------------
def aggregate_kernel(xw_ref, b_ref, a_ref, o_ref, acc_ref, *, apply_relu):
    k = pl.program_id(1)

    @pl.when(k == 0)
    def _init():
        acc_ref[...] = jnp.zeros_like(acc_ref)

    acc_ref[...] += jnp.dot(a_ref[...], xw_ref[...],
                            preferred_element_type=jnp.float32)

    @pl.when(k == pl.num_programs(1) - 1)
    def _finalize():
        out = acc_ref[...] + b_ref[...]
        if apply_relu:
            out = jnp.maximum(out, 0.0)
        o_ref[...] = out.astype(o_ref.dtype)


def _aggregate(a_p, xw_p, b_p, *, apply_relu, out_dtype, tile):
    n_pad = a_p.shape[0]
    d_pad = xw_p.shape[1]
    grid = (n_pad // tile, n_pad // tile)
    kernel = functools.partial(aggregate_kernel, apply_relu=apply_relu)

    # Explicit VMEM budget (double-buffered A + XW + out, f32 acc, bias) with a
    # 2x margin; capped at 48 MiB so it also fits v7x's 64 MiB physical VMEM.
    out_bytes = jnp.dtype(out_dtype).itemsize
    vmem_bytes = (
        2 * tile * tile * a_p.dtype.itemsize       # A tiles (double-buffered)
        + 2 * tile * d_pad * xw_p.dtype.itemsize   # XW strips (double-buffered)
        + tile * d_pad * 4                         # f32 accumulator scratch
        + 2 * tile * d_pad * out_bytes             # output tiles
        + d_pad * 4                                # bias
    )
    vmem_limit = int(min(max(2 * vmem_bytes, 8 * 1024 * 1024), 48 * 1024 * 1024))

    return pl.pallas_call(
        kernel,
        out_shape=jax.ShapeDtypeStruct((n_pad, d_pad), out_dtype),
        grid=grid,
        in_specs=[
            pl.BlockSpec((tile, d_pad), lambda i, k: (k, 0)),   # XW strip (per k)
            pl.BlockSpec((1, d_pad), lambda i, k: (0, 0)),      # bias (512 B)
            pl.BlockSpec((tile, tile), lambda i, k: (i, k)),    # A tile (streams)
        ],
        out_specs=pl.BlockSpec((tile, d_pad), lambda i, k: (i, 0)),
        scratch_shapes=[pltpu.VMEM((tile, d_pad), jnp.float32)],
        compiler_params=pltpu.CompilerParams(
            dimension_semantics=("parallel", "arbitrary"),
            vmem_limit_bytes=vmem_limit),
    )(xw_p, b_p, a_p)


def gcn_forward(a_hat, x, w1, b1, w2, b2, *, tile=512):
    """out = A_hat @ relu(A_hat @ (X @ W1) + b1) @ W2 + b2 (two tiled passes)."""
    n, in_dim = x.shape
    hid = w1.shape[1]
    out_dim = w2.shape[1]
    b1 = jnp.reshape(b1, (1, -1))
    b2 = jnp.reshape(b2, (1, -1))

    # Tile: 256-512 keeps the HBM-bound A stream near roofline; clamp to the
    # 128-aligned problem size for small graphs.
    tile = max(128, _round_up(min(tile, _round_up(n, 128)), 128))
    n_pad = _round_up(n, tile)
    f_pad = _round_up(in_dim, 128)
    h_pad = _round_up(hid, 128)
    o_pad = _round_up(out_dim, 128)

    # One-time pads / casts in the wrapper.  A_hat is the only O(N^2) operand;
    # bf16 halves its HBM traffic (f32 accumulation inside the kernel).
    a_p = _pad2(a_hat, n_pad, n_pad, jnp.bfloat16)
    x_p = _pad2(x, n_pad, f_pad, jnp.float32)
    w1_p = _pad2(w1, f_pad, h_pad, jnp.float32)
    w2_p = _pad2(w2, h_pad, o_pad, jnp.bfloat16)
    b1_p = _pad2(b1, 1, h_pad, jnp.float32)
    b2_p = _pad2(b2, 1, o_pad, jnp.float32)

    # Layer 1: project once in f32 (single rounding to bf16), then aggregate.
    xw1 = _project(x_p, w1_p, tile=tile, out_dtype=jnp.bfloat16)
    h = _aggregate(a_p, xw1, b1_p, apply_relu=True,
                   out_dtype=jnp.bfloat16, tile=tile)

    # Layer 2 (final output kept f32 to match the module's output dtype).
    xw2 = _project(h, w2_p, tile=tile, out_dtype=jnp.bfloat16)
    y = _aggregate(a_p, xw2, b2_p, apply_relu=False,
                   out_dtype=jnp.float32, tile=tile)
    return y[:n, :out_dim]


def build_normalized_adjacency(edge_index, num_nodes):
    """Dense D^-1/2 (A + I) D^-1/2 matching PyG GCNConv's gcn_norm (glue).

    Duplicate (non-self-loop) edges scatter-add like PyG's message passing;
    self-loops in edge_index are replaced by the single unit self-loop that
    add_remaining_self_loops installs, so the diagonal is not double-counted.
    """
    src, dst = edge_index[0], edge_index[1]
    w = jnp.where(src != dst, 1.0, 0.0).astype(jnp.float32)
    a = jnp.zeros((num_nodes, num_nodes), jnp.float32)
    a = a.at[dst, src].add(w)                        # aggregate src -> dst rows
    a = a + jnp.eye(num_nodes, dtype=jnp.float32)    # exactly one self-loop/node
    deg = a.sum(axis=1)
    d_inv_sqrt = jnp.where(deg > 0, 1.0 / jnp.sqrt(deg), 0.0)
    return a * d_inv_sqrt[:, None] * d_inv_sqrt[None, :]


def reference_forward(a_hat, x, w1, b1, w2, b2):
    h = a_hat @ (x @ w1) + b1
    h = jnp.maximum(h, 0.0)
    return a_hat @ (h @ w2) + b2


if __name__ == "__main__":
    # Small synthetic graph consistent with GCNModel(input_dim, hidden, output).
    # 600 nodes with tile=256 pads to 768 -> a (3, 3) grid that exercises the
    # accumulator machinery, the parallel row axis, and padded rows/cols.
    num_nodes = 600
    input_dim = 8
    hidden_dim = 32
    output_dim = 4
    num_edges = 2400

    key = jax.random.PRNGKey(0)
    kx, ke, kw1, kb1, kw2, kb2 = jax.random.split(key, 6)

    # data.x : [N, input_dim], data.edge_index : [2, E]
    x = jax.random.normal(kx, (num_nodes, input_dim), dtype=jnp.float32)
    edge_index = jax.random.randint(ke, (2, num_edges), 0, num_nodes)

    # Deterministic parameter init (GCNConv: weight [in, out] + bias [out]).
    w1 = jax.random.normal(kw1, (input_dim, hidden_dim), jnp.float32) * 0.1
    b1 = jax.random.normal(kb1, (1, hidden_dim), jnp.float32) * 0.1
    w2 = jax.random.normal(kw2, (hidden_dim, output_dim), jnp.float32) * 0.1
    b2 = jax.random.normal(kb2, (1, output_dim), jnp.float32) * 0.1

    a_hat = build_normalized_adjacency(edge_index, num_nodes)

    out = gcn_forward(a_hat, x, w1, b1, w2, b2, tile=256)
    out = jax.block_until_ready(out)

    ref = reference_forward(a_hat, x, w1, b1, w2, b2)
    assert out.shape == (num_nodes, output_dim)
    # bf16 A_hat / XW with f32 accumulation: expect ~1e-2-level deviation vs f32.
    assert jnp.allclose(out, ref, atol=3e-2, rtol=3e-2), (
        float(jnp.max(jnp.abs(out - ref))))

    print("KERNEL_OK")
</pallas_src>

<mosaic_0001>
module attributes {stable_mosaic.version = 11 : i64} {
  func.func @project_kernel(%arg0: i32, %arg1: memref<256x128xf32, #tpu.memory_space<vmem>>, %arg2: memref<128x128xf32, #tpu.memory_space<vmem>>, %arg3: memref<256x128xbf16, #tpu.memory_space<vmem>>) attributes {dimension_semantics = [#tpu.dimension_semantics<parallel>], iteration_bounds = array<i64: 3>, scalar_prefetch = 0 : i64, scratch_operands = 0 : i64, tpu.core_type = #tpu.core_type<tc>, window_params = [{transform_indices = @transform_0, window_bounds = array<i64: 256, 128>}, {pipeline_mode = #tpu.pipeline_mode<synchronous>, transform_indices = @transform_1, window_bounds = array<i64: 128, 128>}, {transform_indices = @transform_2, window_bounds = array<i64: 256, 128>}]} {
    %c0 = arith.constant 0 : index
    %c0_0 = arith.constant 0 : index
    %0 = vector.load %arg1[%c0, %c0_0] : memref<256x128xf32, #tpu.memory_space<vmem>>, vector<256x128xf32>
    %c0_1 = arith.constant 0 : index
    %c0_2 = arith.constant 0 : index
    %1 = vector.load %arg2[%c0_1, %c0_2] : memref<128x128xf32, #tpu.memory_space<vmem>>, vector<128x128xf32>
    %cst = arith.constant dense<0.000000e+00> : vector<256x128xf32>
    %2 = tpu.matmul %0, %1, %cst {dimension_numbers = #tpu.dot_dimension_numbers<[1], [0], [0], [1], [0, 0, 1, 1], [], []>} : vector<256x128xf32>, vector<128x128xf32>, vector<256x128xf32> -> vector<256x128xf32>
    %3 = arith.truncf %2 : vector<256x128xf32> to vector<256x128xbf16>
    %c0_3 = arith.constant 0 : index
    %c0_4 = arith.constant 0 : index
    %4 = vector.load %arg3[%c0_3, %c0_4] : memref<256x128xbf16, #tpu.memory_space<vmem>>, vector<256x128xbf16>
    tpu.vector_store %arg3[%c0_3, %c0_4], %3 {strides = array<i32>} : memref<256x128xbf16, #tpu.memory_space<vmem>>, vector<256x128xbf16>,
    return
  }
  func.func @transform_0(%arg0: i32) -> (i32, i32) {
    %c0_i32 = arith.constant 0 : i32
    %c0_i32_0 = arith.constant 0 : i32
    return %arg0, %c0_i32 : i32, i32
  }
  func.func @transform_1(%arg0: i32) -> (i32, i32) {
    %c0_i32 = arith.constant 0 : i32
    %c0_i32_0 = arith.constant 0 : i32
    %c0_i32_1 = arith.constant 0 : i32
    return %c0_i32, %c0_i32_0 : i32, i32
  }
  func.func @transform_2(%arg0: i32) -> (i32, i32) {
    %c0_i32 = arith.constant 0 : i32
    %c0_i32_0 = arith.constant 0 : i32
    return %arg0, %c0_i32 : i32, i32
  }
}

</mosaic_0001>

<bundles_post_ra>
// kernel: tpu_custom_call.1
= control target key start
LH: loop header
LB: loop body
LE: loop exit
PB: predicated region body
PF: predicated region fallthrough
CT: control target
= control target key end

     0   :  { %7 = vsyncpa [#allocation3], 0  ;;  %s1527_s0 = inlined_call_operand.hbm [shape: f32[768,128], index: 0, kind: input, shape index: {}]   ;;  %s1528_s1 = inlined_call_operand.hbm [shape: f32[128,128], index: 1, kind: input, shape index: {}]   ;;  %s1529_s2 = inlined_call_operand.hbm [shape: bf16[768,128], index: 2, kind: output, shape index: {}]  }
   0x1   :  { %9 = vsyncpa [#allocation3 + $0x1], 0 }
   0x2   :  { %10 = vsyncpa [#allocation6], 0 }
   0x3   :  { %11 = vsyncpa [#allocation4], 0 }
   0x4   :  { %13 = vsyncpa [#allocation4 + $0x1], 0  ;;  %s1275_s9 = smov 0   ;;  %s1277_s10 = smov 0  }
   0x5   :  { %s1279_s11 = smov 0   ;;  %s1281_s12 = smov 0  }
   0x6 LB: > { %s1296_s13 = sadd.s32 4294967295, %s1251_s12   ;;  %s709_s14 = sadd.s32 4294967294, %s1251_s12   ;;  %s1251_s12 = sphi %s1281_s12, %s1548_s12   ;;  %s1247_s11 = sphi %s1279_s11, %s1547_s11   ;;  %s1243_s10 = sphi %s1277_s10, %s1546_s10   ;;  %s1239_s9 = sphi %s1275_s9, %s1545_s9  }
   0x7   : > { %p39_p0 = scmp.ne.s32.totalorder %s1243_s10, %s1239_s9  ;;  %p1530_p1 = scmp.eq.s32.totalorder %s1296_s13, 0 }
   0x8   : > { %p90_p3 = scmp.eq.s32.totalorder %s709_s14, 2  ;;  %p710_p5 = scmp.ge.s32.totalorder %s1251_s12, 1 }
   0x9   : > { %p1305_p4 = por %p1530_p1, %p39_p0  ;;  %p97_p7 = scmp.lt.s32.totalorder %s1251_s12, 4 }
   0xa   : > { %p1310_p6 = por %p90_p3, %p39_p0  ;;  %s1253_s18 = smov [#allocation5]  }
   0xb   : > { %s1533_s15 = scalar_select %p1305_p4, 1, 0 }
   0xc   : > { %s1534_s16 = scalar_select %p1310_p6, 1, 0 }
   0xd   : > { %p1315_p8 = pnand %p710_p5, %p97_p7  ;;  %s109_s19 = sshll.u32 %s1253_s18, 4  ;;  %s110_s19 = int_to_ptr.vmem [resolvable:$true] %s109_s19 }
   0xe   : > { %s1328_s21 = sadd.s32 1, %s1251_s12   ;;  %s26_s22 = sadd.s32 1, %s1247_s11 }
   0xf   : > { %s1535_s17 = scalar_select %p1315_p8, 1, 0 }
  0x10   : > { %p1070_p9 = pneg %p1315_p8  ;;  %s23_s23 = ssub.s32 %s1251_s12, %s1328_s21 }
  0x11   : > { %s1123_s26 = scalar_lea.hbm %s1528_s1, 2048 }
  0x12   : > { %p1323_p10 = pnand %p1070_p9, %p1530_p1  ;;  %p1124_p11 = scmp.ne.s32.totalorder %s1528_s1, %s1123_s26 }
  0x13   : > { %p1130_p3 = scmp.lt.u32.totalorder %s1123_s26, %s1528_s1 }
  0x14   : > { %p1125_p12 = pneg %p1323_p10 }
  0x16   : > { %p1126_p13 = pnand %p1125_p12, %p1124_p11 }
  0x18   : > { %p1127_p0 = pneg %p1126_p13 }
  0x1a   : > { %p1132_p5 = pnand %p1130_p3, %p1127_p0 }
  0x1c   : > { %1135 = shalt.err (!%p1132_p5)
}
  0x1d   : > { %s1136_s3 = scalar_lea.vmem %s110_s19, 2048  ;;  %p1144_p2 = scmp.lt.s32.totalorder %s110_s19, %s110_s19 }
  0x1e   : > { %p1137_p7 = scmp.ne.s32.totalorder %s110_s19, %s1136_s3  ;;  %p1145_p6 = scmp.lt.s32.totalorder %s1136_s3, %s1136_s3 }
  0x20   : > { %p1139_p9 = pnand %p1137_p7, %p1125_p12  ;;  %p1146_p4 = por %p1145_p6, %p1144_p2 }
  0x22   : > { %p1140_p1 = pneg %p1139_p9 }
  0x24   : > { %p1147_p8 = pnand %p1146_p4, %p1140_p1 }
  0x26   : > { %1150 = shalt.err (!%p1147_p8)
}
  0x27   : > { %s1254_s4 = smov 128   ;;  %s1255_s5 = smov 8  }
  0x28   : > { %1073 = dma.hbm_to_vmem [thread:$0]  (!%p1323_p10), %s1528_s1, 2048, %s110_s19, [#allocation6], %s1254_s4, %s1254_s4, %s1255_s5  }
  0x29   : > { %p24_p1 = scmp.eq.s32.totalorder %s23_s23, 0  ;;  %p33_p2 = scmp.ne.s32.totalorder %s1247_s11, %s1243_s10 }
  0x2a   : > { %p34_p4 = scmp.eq.s32.totalorder %s1251_s12, 0  ;;  %p1083_p6 = scmp.lt.s32.totalorder %s1251_s12, 3 }
  0x2b   : > { %s1357_s8 = scalar_select %p24_p1, %s1247_s11, %s26_s22  }
  0x2c   : > { %p35_p8 = por %p34_p4, %p33_p2  ;;  %p1537_p11 = scmp.eq.s32.totalorder %s1296_s13, 2 }
  0x2d   : > { %s123_s18 = sand.u32 1, %s1247_s11   ;;  %s757_s20 = sshll.u32 %s1251_s12, 12 }
  0x2e   : > { %p1361_p12 = por %p1537_p11, %p33_p2  ;;  %s713_s24 = sshll.u32 %s123_s18, 8 }
  0x2f   : > { %s1370_s27 = scalar_lea.hbm %s1527_s0, %s757_s20  ;;  %s127_s19 = scalar_lea.vmem [#allocation2], %s713_s24 }
  0x30   : > { %s134_s22 = sshll.u32 %s127_s19, 4  ;;  %p1372_p10 = pnand %p1083_p6, %p35_p8  ;;  %s1376_s22 = int_to_ptr.vmem [resolvable:$true] %s134_s22 }
  0x31   : > { %s1378_s28 = scalar_lea.sflag [#allocation3], %s123_s18  ;;  %s1151_s29 = scalar_lea.hbm %s1370_s27, 4096 }
  0x32   : > { %p1152_p13 = scmp.ne.s32.totalorder %s1370_s27, %s1151_s29  ;;  %p1153_p0 = pneg %p1372_p10 }
  0x33   : > { %s1156_s6 = scalar_lea.hbm %s1527_s0, 12288  ;;  %p1157_p7 = scmp.lt.u32.totalorder %s1370_s27, %s1527_s0 }
  0x34   : > { %p1154_p3 = pnand %p1153_p0, %p1152_p13  ;;  %p1158_p9 = scmp.lt.u32.totalorder %s1156_s6, %s1151_s29 }
  0x35   : > { %p1160_p2 = scmp.lt.u32.totalorder %s1151_s29, %s1370_s27 }
  0x36   : > { %p1155_p5 = pneg %p1154_p3  ;;  %p1159_p1 = por %p1158_p9, %p1157_p7 }
  0x38   : > { %p1161_p4 = por %p1160_p2, %p1159_p1 }
  0x3a   : > { %p1162_p6 = pnand %p1161_p4, %p1155_p5 }
  0x3c   : > { %1165 = shalt.err (!%p1162_p6)
}
  0x3d   : > { %s1166_s18 = scalar_lea.vmem %s1376_s22, 4096  ;;  %s1256_s24 = smov [#allocation2]  }
  0x3e   : > { %p1167_p8 = scmp.ne.s32.totalorder %s1376_s22, %s1166_s18  ;;  %s1171_s25 = sshll.u32 %s1256_s24, 4  ;;  %s1172_s25 = int_to_ptr.vmem [resolvable:$false] %s1171_s25 }
  0x3f   : > { %s1173_s26 = scalar_lea.vmem %s1172_s25, 8192  ;;  %p1174_p3 = scmp.lt.s32.totalorder %s1376_s22, %s1172_s25 }
  0x40   : > { %p1169_p11 = pnand %p1167_p8, %p1153_p0  ;;  %p1175_p7 = scmp.lt.s32.totalorder %s1173_s26, %s1166_s18 }
  0x42   : > { %p1170_p13 = pneg %p1169_p11  ;;  %p1176_p9 = por %p1175_p7, %p1174_p3 }
  0x44   : > { %p1177_p1 = pnand %p1176_p9, %p1170_p13 }
  0x46   : > { %1180 = shalt.err (!%p1177_p1)
}
  0x47   : > { %1077 = dma.hbm_to_vmem [thread:$0]  (!%p1372_p10), %s1370_s27, 4096, %s1376_s22, %s1378_s28, %s1254_s4, %s1254_s4, %s1255_s5  }
  0x48   : > { %p1540_p0 = scmp.ne.s32.totalorder %s1535_s17, 0 }
  0x49   : > { %s1412_s19 = sand.u32 (!%p1540_p0), 1, %s1243_s10   ;;  %p1541_p5 = scmp.ne.s32.totalorder (!%p1540_p0), %s1533_s15, 0 }
  0x4a   : > { %146 = sbr.rel (%p1540_p0) target bundleno = 378 (0x17a), region = 28  ;;  %s717_s29 = sshll.u32 (!%p1540_p0), %s1412_s19, 8 }
  0x4b   : > { %s149_s30 = scalar_lea.sflag (!%p1540_p0), [#allocation3], %s1412_s19  ;;  %s1416_s3 = scalar_lea.vmem (!%p1540_p0), [#allocation2], %s717_s29 }
  0x51   : > { %1226 = dma.done.wait (%p1541_p5), %s149_s30, 4096  }
  0x52   : > { %1228 = vsyncadd (%p1541_p5), %s149_s30, 4294963200  ;;  %p1542_p10 = scmp.eq.s32.totalorder %s1296_s13, 0 }
  0x54   : > { %1230 = dma.done.wait (%p1542_p10), [#allocation6], 2048   ;;  %p1543_p2 = pmov %p1542_p10 }
  0x55   : > { %v211_v0 = vld [vmem:[#allocation5] sm:$0xff]  ;;  %v212_v1 = vld [vmem:[#allocation5 + $0x8] sm:$0xff]  ;;  %v213_v2 = vld [vmem:[#allocation5 + $0x10] sm:$0xff]  ;;  %s719_s15 = sshll.u32 %s1412_s19, 7  ;;  %s790_s4 = sshll.u32 %s1296_s13, 11 }
  0x56   : > { %1232 = vsyncadd (%p1543_p2), [#allocation6], 4294965248  ;;  %v1014_v3 = vpack.c.bf16 %v212_v1, %v211_v0  ;;  %v214_v4 = vld [vmem:[#allocation5 + $0x18] sm:$0xff]  ;;  %v215_v6 = vld [vmem:[#allocation5 + $0x20] sm:$0xff]  ;;  %s1459_s17 = scalar_lea.vmem [#allocation7], %s719_s15  ;;  %s1480_s23 = scalar_lea.hbm %s1529_s2, %s790_s4 }
  0x57   : > { %v1018_v5 = vpack.c.bf16 %v214_v4, %v213_v2  ;;  %v216_v7 = vld [vmem:[#allocation5 + $0x28] sm:$0xff]  ;;  %v179_v9 = vld [vmem:[%s1416_s3] sm:$0xff]  ;;  %v217_v11 = vld [vmem:[#allocation5 + $0x30] sm:$0xff]  ;;  %s626_s5 = sshll.u32 %s1459_s17, 4  ;;  %s613_s13 = scalar_lea.sflag [#allocation4], %s1412_s19  ;;  %s1482_s5 = int_to_ptr.vmem [resolvable:$true] %s626_s5 }
  0x58   : > { %1015 = vmatprep.subr.bf16.mxu0 %v1014_v3  ;;  %1046 = vmatprep.subr.bf16.mxu1 %v1014_v3  ;;  %v1022_v8 = vpack.c.bf16 %v216_v7, %v215_v6  ;;  %v195_v10 = vld [vmem:[%s1416_s3 + $0x80] sm:$0xff]  ;;  %v218_v12 = vld [vmem:[#allocation5 + $0x38] sm:$0xff]  ;;  %v220_v15 = vld [vmem:[#allocation5 + $0x48] sm:$0xff]  ;;  %s1181_s28 = scalar_lea.vmem %s1482_s5, 2048  ;;  %s1257_s6 = smov [#allocation7]  }
  0x59   : > { %1017 = vmatpush3.bf16.msra.mxu0 %v1014_v3  ;;  %1054 = vmatpush3.bf16.msra.mxu1 %v1014_v3  ;;  %v1026_v13 = vpack.c.bf16 %v218_v12, %v217_v11  ;;  %v219_v14 = vld [vmem:[#allocation5 + $0x40] sm:$0xff]  ;;  %v221_v17 = vld [vmem:[#allocation5 + $0x50] sm:$0xff]  ;;  %v222_v18 = vld [vmem:[#allocation5 + $0x58] sm:$0xff]  ;;  %p1182_p4 = scmp.ne.s32.totalorder %s1482_s5, %s1181_s28  ;;  %s1185_s7 = sshll.u32 %s1257_s6, 4  ;;  %s1186_s7 = int_to_ptr.vmem [resolvable:$false] %s1185_s7 }
  0x5a   : > { %1019 = vmatprep.subr.bf16.mxu0 %v1018_v5  ;;  %1047 = vmatprep.subr.bf16.mxu1 %v1018_v5  ;;  %v1030_v16 = vpack.c.bf16 %v220_v15, %v219_v14  ;;  %v1034_v19 = vpack.c.bf16 %v222_v18, %v221_v17  ;;  %v223_v20 = vld [vmem:[#allocation5 + $0x60] sm:$0xff]  ;;  %v224_v21 = vld [vmem:[#allocation5 + $0x68] sm:$0xff]  ;;  %v225_v23 = vld [vmem:[#allocation5 + $0x70] sm:$0xff]  ;;  %s1187_s20 = scalar_lea.vmem %s1186_s7, 4096  ;;  %p1188_p11 = scmp.lt.s32.totalorder %s1482_s5, %s1186_s7 }
  0x5b   : > { %966 = vmatprep.mubr.f32.mxu0 %v179_v9  ;;  %990 = vmatprep.mubr.f32.mxu1 %v195_v10  ;;  %v1038_v22 = vpack.c.bf16 %v224_v21, %v223_v20  ;;  %v226_v24 = vld [vmem:[#allocation5 + $0x78] sm:$0xff]  ;;  %v180_v26 = vld [vmem:[%s1416_s3 + $0x8] sm:$0xff]  ;;  %v181_v28 = vld [vmem:[%s1416_s3 + $0x10] sm:$0xff]  ;;  %p1183_p6 = pnand %p1182_p4, %p1361_p12  ;;  %p1189_p13 = scmp.lt.s32.totalorder %s1187_s20, %s1181_s28 }
  0x5c   : > { %v1042_v25 = vpack.c.bf16 %v226_v24, %v225_v23  ;;  %v196_v27 = vld [vmem:[%s1416_s3 + $0x88] sm:$0xff]  ;;  %v197_v29 = vld [vmem:[%s1416_s3 + $0x90] sm:$0xff]  ;;  %v182_v30 = vld [vmem:[%s1416_s3 + $0x18] sm:$0xff] }
  0x5d   : > { %1021 = vmatpush3.bf16.msra.mxu0 %v1018_v5  ;;  %1055 = vmatpush3.bf16.msra.mxu1 %v1018_v5  ;;  %v198_v31 = vld [vmem:[%s1416_s3 + $0x98] sm:$0xff]  ;;  %v183_v32 = vld [vmem:[%s1416_s3 + $0x20] sm:$0xff]  ;;  %v184_v34 = vld [vmem:[%s1416_s3 + $0x28] sm:$0xff]  ;;  %p1184_p8 = pneg %p1183_p6  ;;  %p1190_p3 = por %p1189_p13, %p1188_p11 }
  0x5e   : > { %1023 = vmatprep.subr.bf16.mxu0 %v1022_v8  ;;  %1048 = vmatprep.subr.bf16.mxu1 %v1022_v8  ;;  %v199_v33 = vld [vmem:[%s1416_s3 + $0xa0] sm:$0xff]  ;;  %v200_v35 = vld [vmem:[%s1416_s3 + $0xa8] sm:$0xff]  ;;  %v185_v36 = vld [vmem:[%s1416_s3 + $0x30] sm:$0xff] }
  0x5f   : > { %v201_v37 = vld [vmem:[%s1416_s3 + $0xb0] sm:$0xff]  ;;  %v186_v38 = vld [vmem:[%s1416_s3 + $0x38] sm:$0xff]  ;;  %v187_v40 = vld [vmem:[%s1416_s3 + $0x40] sm:$0xff]  ;;  %p1191_p7 = pnand %p1190_p3, %p1184_p8 }
  0x60   : > { %v202_v39 = vld [vmem:[%s1416_s3 + $0xb8] sm:$0xff]  ;;  %v203_v41 = vld [vmem:[%s1416_s3 + $0xc0] sm:$0xff]  ;;  %v188_v42 = vld [vmem:[%s1416_s3 + $0x48] sm:$0xff] }
  0x61   : > { %1025 = vmatpush3.bf16.msra.mxu0 %v1022_v8  ;;  %1056 = vmatpush3.bf16.msra.mxu1 %v1022_v8  ;;  %v204_v43 = vld [vmem:[%s1416_s3 + $0xc8] sm:$0xff]  ;;  %v189_v44 = vld [vmem:[%s1416_s3 + $0x50] sm:$0xff]  ;;  %v190_v46 = vld [vmem:[%s1416_s3 + $0x58] sm:$0xff] }
  0x62   : > { %1027 = vmatprep.subr.bf16.mxu0 %v1026_v13  ;;  %1049 = vmatprep.subr.bf16.mxu1 %v1026_v13  ;;  %v205_v45 = vld [vmem:[%s1416_s3 + $0xd0] sm:$0xff]  ;;  %v206_v47 = vld [vmem:[%s1416_s3 + $0xd8] sm:$0xff]  ;;  %v191_v48 = vld [vmem:[%s1416_s3 + $0x60] sm:$0xff] }
  0x63   : > { %v207_v49 = vld [vmem:[%s1416_s3 + $0xe0] sm:$0xff]  ;;  %v192_v50 = vld [vmem:[%s1416_s3 + $0x68] sm:$0xff]  ;;  %v193_v52 = vld [vmem:[%s1416_s3 + $0x70] sm:$0xff] }
  0x64   : > { %v208_v51 = vld [vmem:[%s1416_s3 + $0xe8] sm:$0xff]  ;;  %v209_v53 = vld [vmem:[%s1416_s3 + $0xf0] sm:$0xff]  ;;  %v194_v54 = vld [vmem:[%s1416_s3 + $0x78] sm:$0xff] }
  0x65   : > { %1029 = vmatpush3.bf16.msra.mxu0 %v1026_v13  ;;  %1057 = vmatpush3.bf16.msra.mxu1 %v1026_v13  ;;  %v210_v55 = vld [vmem:[%s1416_s3 + $0xf8] sm:$0xff] }
  0x66   : > { %1031 = vmatprep.subr.bf16.mxu0 %v1030_v16  ;;  %1050 = vmatprep.subr.bf16.mxu1 %v1030_v16 }
  0x69   : > { %1033 = vmatpush3.bf16.msra.mxu0 %v1030_v16  ;;  %1058 = vmatpush3.bf16.msra.mxu1 %v1030_v16 }
  0x6a   : > { %1035 = vmatprep.subr.bf16.mxu0 %v1034_v19  ;;  %1051 = vmatprep.subr.bf16.mxu1 %v1034_v19 }
  0x6d   : > { %1037 = vmatpush3.bf16.msra.mxu0 %v1034_v19  ;;  %1059 = vmatpush3.bf16.msra.mxu1 %v1034_v19 }
  0x6e   : > { %1039 = vmatprep.subr.bf16.mxu0 %v1038_v22  ;;  %1052 = vmatprep.subr.bf16.mxu1 %v1038_v22 }
  0x71   : > { %1041 = vmatpush3.bf16.msra.mxu0 %v1038_v22  ;;  %1060 = vmatpush3.bf16.msra.mxu1 %v1038_v22 }
  0x72   : > { %1043 = vmatprep.subr.bf16.mxu0 %v1042_v25  ;;  %1053 = vmatprep.subr.bf16.mxu1 %v1042_v25 }
  0x75   : > { %1045 = vmatpush3.bf16.msra.mxu0 %v1042_v25  ;;  %1061 = vmatpush3.bf16.msra.mxu1 %v1042_v25 }
  0x78   : > { %967 = vmatmul.mubr.f32.vlgmr.msra.gmra.mrb[0].mxu0 %v180_v26  ;;  %991 = vmatmul.mubr.f32.vlgmr.msra.gmra.mrb[0].mxu1 %v196_v27 }
  0x79   : > { %969 = vmatprep.mubr.f32.mxu0 %v181_v28  ;;  %993 = vmatprep.mubr.f32.mxu1 %v197_v29 }
  0x7c   : > { %970 = vmatmul.mubr.f32.gmra.mrb[2].mxu0 %v182_v30  ;;  %994 = vmatmul.mubr.f32.gmra.mrb[2].mxu1 %v198_v31 }
  0x7d   : > { %972 = vmatprep.mubr.f32.mxu0 %v183_v32  ;;  %996 = vmatprep.mubr.f32.mxu1 %v199_v33 }
  0x80   : > { %973 = vmatmul.mubr.f32.gmra.mrb[4].mxu0 %v184_v34  ;;  %997 = vmatmul.mubr.f32.gmra.mrb[4].mxu1 %v200_v35 }
  0x81   : > { %975 = vmatprep.mubr.f32.mxu0 %v185_v36  ;;  %999 = vmatprep.mubr.f32.mxu1 %v201_v37 }
  0x84   : > { %976 = vmatmul.mubr.f32.gmra.mrb[6].mxu0 %v186_v38  ;;  %1000 = vmatmul.mubr.f32.gmra.mrb[6].mxu1 %v202_v39 }
  0x85   : > { %978 = vmatprep.mubr.f32.mxu0 %v187_v40  ;;  %1002 = vmatprep.mubr.f32.mxu1 %v203_v41 }
  0x88   : > { %979 = vmatmul.mubr.f32.gmra.mrb[8].mxu0 %v188_v42  ;;  %1003 = vmatmul.mubr.f32.gmra.mrb[8].mxu1 %v204_v43 }
  0x89   : > { %981 = vmatprep.mubr.f32.mxu0 %v189_v44  ;;  %1005 = vmatprep.mubr.f32.mxu1 %v205_v45 }
  0x8c   : > { %982 = vmatmul.mubr.f32.gmra.mrb[10].mxu0 %v190_v46  ;;  %1006 = vmatmul.mubr.f32.gmra.mrb[10].mxu1 %v206_v47 }
  0x8d   : > { %984 = vmatprep.mubr.f32.mxu0 %v191_v48  ;;  %1008 = vmatprep.mubr.f32.mxu1 %v207_v49 }
  0x90   : > { %985 = vmatmul.mubr.f32.gmra.mrb[12].mxu0 %v192_v50  ;;  %1009 = vmatmul.mubr.f32.gmra.mrb[12].mxu1 %v208_v51 }
  0x91   : > { %987 = vmatprep.mubr.f32.mxu0 %v193_v52  ;;  %1011 = vmatprep.mubr.f32.mxu1 %v209_v53 }
  0x94   : > { %988 = vmatmul.mubr.f32.gmra.mrb[14].mxu0 %v194_v54  ;;  %1012 = vmatmul.mubr.f32.gmra.mrb[14].mxu1 %v210_v55 }
 0x14b   : > { %v968_v56 = vpop.f32.mrb[0].mxu0  ;;  %v992_v57 = vpop.f32.mrb[0].mxu1 }
 0x14c   : > { %v293_v58 = vpop.f32.mrb[1].mxu0  ;;  %v373_v59 = vpop.f32.mrb[1].mxu1 }
 0x14d   : > { %v794_v60 = vpack.c.bf16 %v968_v56, %v293_v58  ;;  %v834_v61 = vpack.c.bf16 %v992_v57, %v373_v59 }
 0x14f   : > { %795 = vst [vmem:[%s1459_s17] sm:$0xff] %v794_v60   ;;  %878 = vst [vmem:[%s1459_s17 + $0x40] sm:$0xff] %v834_v61   ;;  %v971_v62 = vpop.f32.mrb[2].mxu0  ;;  %v995_v63 = vpop.f32.mrb[2].mxu1 }
 0x150   : > { %v303_v0 = vpop.f32.mrb[3].mxu0  ;;  %v383_v1 = vpop.f32.mrb[3].mxu1 }
 0x151   : > { %v799_v2 = vpack.c.bf16 %v971_v62, %v303_v0  ;;  %v839_v3 = vpack.c.bf16 %v995_v63, %v383_v1 }
 0x153   : > { %871 = vst [vmem:[%s1459_s17 + $0x8] sm:$0xff] %v799_v2   ;;  %879 = vst [vmem:[%s1459_s17 + $0x48] sm:$0xff] %v839_v3   ;;  %v974_v4 = vpop.f32.mrb[4].mxu0  ;;  %v998_v5 = vpop.f32.mrb[4].mxu1 }
 0x154   : > { %v313_v6 = vpop.f32.mrb[5].mxu0  ;;  %v393_v7 = vpop.f32.mrb[5].mxu1 }
 0x155   : > { %v804_v8 = vpack.c.bf16 %v974_v4, %v313_v6  ;;  %v844_v9 = vpack.c.bf16 %v998_v5, %v393_v7 }
 0x157   : > { %872 = vst [vmem:[%s1459_s17 + $0x10] sm:$0xff] %v804_v8   ;;  %880 = vst [vmem:[%s1459_s17 + $0x50] sm:$0xff] %v844_v9   ;;  %v977_v10 = vpop.f32.mrb[6].mxu0  ;;  %v1001_v11 = vpop.f32.mrb[6].mxu1 }
 0x158   : > { %v323_v12 = vpop.f32.mrb[7].mxu0  ;;  %v403_v13 = vpop.f32.mrb[7].mxu1 }
 0x159   : > { %v809_v14 = vpack.c.bf16 %v977_v10, %v323_v12  ;;  %v849_v15 = vpack.c.bf16 %v1001_v11, %v403_v13 }
 0x15b   : > { %873 = vst [vmem:[%s1459_s17 + $0x18] sm:$0xff] %v809_v14   ;;  %881 = vst [vmem:[%s1459_s17 + $0x58] sm:$0xff] %v849_v15   ;;  %v980_v16 = vpop.f32.mrb[8].mxu0  ;;  %v1004_v17 = vpop.f32.mrb[8].mxu1 }
 0x15c   : > { %v333_v18 = vpop.f32.mrb[9].mxu0  ;;  %v413_v19 = vpop.f32.mrb[9].mxu1 }
 0x15d   : > { %v814_v20 = vpack.c.bf16 %v980_v16, %v333_v18  ;;  %v854_v21 = vpack.c.bf16 %v1004_v17, %v413_v19 }
 0x15f   : > { %874 = vst [vmem:[%s1459_s17 + $0x20] sm:$0xff] %v814_v20   ;;  %882 = vst [vmem:[%s1459_s17 + $0x60] sm:$0xff] %v854_v21   ;;  %v983_v22 = vpop.f32.mrb[10].mxu0  ;;  %v1007_v23 = vpop.f32.mrb[10].mxu1 }
 0x160   : > { %v343_v24 = vpop.f32.mrb[11].mxu0  ;;  %v423_v25 = vpop.f32.mrb[11].mxu1 }
 0x161   : > { %v819_v26 = vpack.c.bf16 %v983_v22, %v343_v24  ;;  %v859_v27 = vpack.c.bf16 %v1007_v23, %v423_v25 }
 0x163   : > { %875 = vst [vmem:[%s1459_s17 + $0x28] sm:$0xff] %v819_v26   ;;  %883 = vst [vmem:[%s1459_s17 + $0x68] sm:$0xff] %v859_v27   ;;  %v986_v28 = vpop.f32.mrb[12].mxu0  ;;  %v1010_v29 = vpop.f32.mrb[12].mxu1 }
 0x164   : > { %v353_v30 = vpop.f32.mrb[13].mxu0  ;;  %v433_v31 = vpop.f32.mrb[13].mxu1 }
 0x165   : > { %v824_v32 = vpack.c.bf16 %v986_v28, %v353_v30  ;;  %v864_v33 = vpack.c.bf16 %v1010_v29, %v433_v31 }
 0x167   : > { %876 = vst [vmem:[%s1459_s17 + $0x30] sm:$0xff] %v824_v32   ;;  %884 = vst [vmem:[%s1459_s17 + $0x70] sm:$0xff] %v864_v33   ;;  %v989_v34 = vpop.f32.mrb[14].mxu0  ;;  %v1013_v35 = vpop.f32.mrb[14].mxu1 }
 0x168   : > { %v363_v36 = vpop.f32.mrb[15].mxu0  ;;  %v443_v37 = vpop.f32.mrb[15].mxu1 }
 0x169   : > { %v829_v38 = vpack.c.bf16 %v989_v34, %v363_v36  ;;  %v869_v39 = vpack.c.bf16 %v1013_v35, %v443_v37 }
 0x16b   : > { %877 = vst [vmem:[%s1459_s17 + $0x38] sm:$0xff] %v829_v38   ;;  %885 = vst [vmem:[%s1459_s17 + $0x78] sm:$0xff] %v869_v39  }
 0x16c   : > { %1194 = shalt.err (!%p1191_p7)
}
 0x16d   : > { %s1195_s18 = scalar_lea.hbm %s1480_s23, 2048  ;;  %s1199_s26 = scalar_lea.hbm %s1529_s2, 6144 }
 0x16e   : > { %p1196_p9 = scmp.ne.s32.totalorder %s1480_s23, %s1195_s18  ;;  %p1200_p5 = scmp.lt.u32.totalorder %s1480_s23, %s1529_s2 }
 0x16f   : > { %p1201_p10 = scmp.lt.u32.totalorder %s1199_s26, %s1195_s18  ;;  %p1203_p4 = scmp.lt.u32.totalorder %s1195_s18, %s1480_s23 }
 0x170   : > { %p1197_p1 = pnand %p1196_p9, %p1361_p12 }
 0x171   : > { %p1202_p2 = por %p1201_p10, %p1200_p5 }
 0x172   : > { %p1198_p0 = pneg %p1197_p1 }
 0x173   : > { %p1204_p6 = por %p1203_p4, %p1202_p2 }
 0x175   : > { %p1205_p8 = pnand %p1204_p6, %p1198_p0 }
 0x177   : > { %1208 = shalt.err (!%p1205_p8)
}
 0x178   : > { %s1258_s3 = smov 64   ;;  %s1259_s15 = smov 4  }
 0x179   : > { %1068 = dma.vmem_to_hbm [thread:$0]  (%p1361_p12), %s1482_s5, 2048, %s1480_s23, %s613_s13, %s1258_s3, %s1258_s3, %s1259_s15  }
 0x17a PF: > { %p1085_p11 = scmp.ge.s32.totalorder %s1251_s12, 2  ;;  %s641_s17 = sand.u32 1, %s1239_s9  }
 0x17b   : > { %p1544_p13 = scmp.ne.s32.totalorder %s1534_s16, 0  ;;  %s642_s4 = scalar_lea.sflag [#allocation4], %s641_s17 }
 0x17d   : > { %p1079_p3 = pnand %p1085_p11, %p1544_p13 }
 0x17f   : > { %1234 = dma.done.wait (!%p1079_p3), %s642_s4, 2048  }
 0x180   : > { %1236 = vsyncadd (!%p1079_p3), %s642_s4, 4294965248  ;;  %p16_p7 = scmp.ge.s32.totalorder %s1328_s21, 5   ;;  %s1545_s9 = smov %s1243_s10 }
 0x181   : > { %s1546_s10 = smov %s1247_s11  ;;  %s1547_s11 = smov %s1357_s8 }
 0x182   : > { %s1548_s12 = smov %s1328_s21  ;;  %18 = sbr.rel (!%p16_p7) target bundleno = 6 (0x6), region = 77 }
 0x189   :  { %647 = vsyncpa [#allocation3], 1 }
 0x18a   :  { %649 = vsyncpa [#allocation3 + $0x1], 1 }
 0x18b   :  { %650 = vsyncpa [#allocation6], 1 }
 0x18c   :  { %651 = vsyncpa [#allocation4], 1 }
 0x18d   :  { %653 = vsyncpa [#allocation4 + $0x1], 1 }

</bundles_post_ra>
